<compile_context>
chip_gen: v7x
topology: tpu7x:2x2x1
jax: 0.10.0
libtpu: 0.0.40
codegen_flags: <defaults>
</compile_context>

<pallas_src>
import jax
import jax.numpy as jnp
from jax.experimental import pallas as pl
from jax.experimental.pallas import tpu as pltpu

NEG_SLOPE = 0.01                       # torch.nn.LeakyReLU default
VMEM_LIMIT = 48 * 1024 * 1024          # explicit; safe on v7x (64 MiB physical)


def _round_up(v, m):
    return ((v + m - 1) // m) * m


def _pick_tile(n):
    # Bigger node tiles approach the HBM roofline at scale; 128 is the floor
    # imposed by the (8, 128) layout / lane-dense stores.
    for t in (512, 256, 128):
        if n >= t:
            return t
    return 128


def _leaky_relu(v):
    return jnp.where(v >= 0, v, NEG_SLOPE * v)


# ----------------------------------------------------------------------------
# Stage A/B kernels: one SAGE layer (mean-agg + fused linear + LeakyReLU),
# optionally with the final fc fused in (stage B).
#   grid = (N/TM, N/TK); the k axis reduces over column-blocks of A.
#   acc_ref: f32 VMEM scratch [TM, 2*Din]; [:, :Din] accumulates A@x,
#            [:, Din:] holds the root features, so the finalize step is a
#            single K = 2*Din bf16 matmul against the stacked [W_l ; W_r].
# ----------------------------------------------------------------------------
def sage_layer_kernel(a_ref, xagg_ref, xroot_ref, w_ref, b_ref, out_ref, acc_ref):
    din = xroot_ref.shape[-1]
    k = pl.program_id(1)

    @pl.when(k == 0)
    def _init():
        acc_ref[:, :din] = jnp.zeros((acc_ref.shape[0], din), jnp.float32)
        acc_ref[:, din:] = xroot_ref[...].astype(jnp.float32)

    acc_ref[:, :din] += jnp.dot(a_ref[...], xagg_ref[...],
                                preferred_element_type=jnp.float32)

    @pl.when(k == pl.num_programs(1) - 1)
    def _finalize():
        inp = acc_ref[...].astype(jnp.bfloat16)                 # [TM, 2*Din]
        h = jnp.dot(inp, w_ref[...],
                    preferred_element_type=jnp.float32) + b_ref[...]
        h = _leaky_relu(h)
        # dropout: eval-mode identity
        out_ref[...] = h.astype(out_ref.dtype)


def sage_layer_fc_kernel(a_ref, xagg_ref, xroot_ref, w_ref, b_ref,
                         wfc_ref, bfc_ref, out_ref, acc_ref):
    din = xroot_ref.shape[-1]
    k = pl.program_id(1)

    @pl.when(k == 0)
    def _init():
        acc_ref[:, :din] = jnp.zeros((acc_ref.shape[0], din), jnp.float32)
        acc_ref[:, din:] = xroot_ref[...].astype(jnp.float32)

    acc_ref[:, :din] += jnp.dot(a_ref[...], xagg_ref[...],
                                preferred_element_type=jnp.float32)

    @pl.when(k == pl.num_programs(1) - 1)
    def _finalize():
        inp = acc_ref[...].astype(jnp.bfloat16)                 # [TM, 2*Din]
        h = jnp.dot(inp, w_ref[...],
                    preferred_element_type=jnp.float32) + b_ref[...]
        h = _leaky_relu(h)
        # dropout: eval-mode identity
        z = jnp.dot(h.astype(jnp.bfloat16), wfc_ref[...],
                    preferred_element_type=jnp.float32) + bfc_ref[...]
        out_ref[...] = z.astype(out_ref.dtype)


def _sage_layer(a, xin, w_stacked, b, tile, wfc=None, bfc=None):
    np_ = a.shape[0]
    din = xin.shape[1]
    hout = w_stacked.shape[1]
    grid = (np_ // tile, np_ // tile)

    in_specs = [
        pl.BlockSpec((tile, tile), lambda i, k: (i, k)),      # A row/col block
        pl.BlockSpec((tile, din), lambda i, k: (k, 0)),       # neighbor features
        pl.BlockSpec((tile, din), lambda i, k: (i, 0)),       # root features (k-resident)
        pl.BlockSpec((2 * din, hout), lambda i, k: (0, 0)),   # stacked [W_l; W_r] (resident)
        pl.BlockSpec((1, hout), lambda i, k: (0, 0)),         # bias (f32, resident)
    ]
    args = [a, xin, xin, w_stacked, b]
    kernel = sage_layer_kernel
    if wfc is not None:
        in_specs += [pl.BlockSpec((hout, hout), lambda i, k: (0, 0)),
                     pl.BlockSpec((1, hout), lambda i, k: (0, 0))]
        args += [wfc, bfc]
        kernel = sage_layer_fc_kernel

    flops = 2 * np_ * np_ * din + 2 * np_ * (2 * din) * hout
    if wfc is not None:
        flops += 2 * np_ * hout * hout
    bytes_accessed = (a.size * 2 + 2 * xin.size * 2
                      + w_stacked.size * 2 + np_ * hout * 2)

    return pl.pallas_call(
        kernel,
        out_shape=jax.ShapeDtypeStruct((np_, hout), jnp.bfloat16),
        grid_spec=pltpu.PrefetchScalarGridSpec(
            num_scalar_prefetch=0,
            grid=grid,
            in_specs=in_specs,
            out_specs=pl.BlockSpec((tile, hout), lambda i, k: (i, 0)),
            scratch_shapes=[pltpu.VMEM((tile, 2 * din), jnp.float32)],
        ),
        compiler_params=pltpu.CompilerParams(
            dimension_semantics=("parallel", "arbitrary"),
            vmem_limit_bytes=VMEM_LIMIT,
        ),
        cost_estimate=pl.CostEstimate(
            flops=int(flops), transcendentals=0,
            bytes_accessed=int(bytes_accessed)),
    )(*args)


# ----------------------------------------------------------------------------
# Stage C kernel: out[i, j] = sigmoid(z_i @ z_j^T), tiled over (i, j).
#   z_i tile stays resident across the inner j loop; z_j streams.
# ----------------------------------------------------------------------------
def similarity_kernel(zi_ref, zj_ref, out_ref):
    s = jax.lax.dot_general(zi_ref[...], zj_ref[...],
                            dimension_numbers=(((1,), (1,)), ((), ())),
                            preferred_element_type=jnp.float32)
    out_ref[...] = jax.nn.sigmoid(s)


def _similarity(z, tile):
    np_, hp = z.shape
    grid = (np_ // tile, np_ // tile)
    return pl.pallas_call(
        similarity_kernel,
        out_shape=jax.ShapeDtypeStruct((np_, np_), jnp.float32),
        grid_spec=pltpu.PrefetchScalarGridSpec(
            num_scalar_prefetch=0,
            grid=grid,
            in_specs=[pl.BlockSpec((tile, hp), lambda i, j: (i, 0)),
                      pl.BlockSpec((tile, hp), lambda i, j: (j, 0))],
            out_specs=pl.BlockSpec((tile, tile), lambda i, j: (i, j)),
        ),
        compiler_params=pltpu.CompilerParams(
            dimension_semantics=("parallel", "parallel"),
            vmem_limit_bytes=VMEM_LIMIT,
        ),
        cost_estimate=pl.CostEstimate(
            flops=int(2 * np_ * np_ * hp),
            transcendentals=int(np_ * np_),
            bytes_accessed=int(2 * z.size * 2 + np_ * np_ * 4)),
    )(z, z)


# ----------------------------------------------------------------------------
# Wrapper / glue (plain JAX): dense mean-aggregation matrix, padding, weight
# stacking, then the three tiled pallas_calls.
# ----------------------------------------------------------------------------
def community_detection_gnn(x, edge_index, params):
    """x: [N, D] float32 node features; edge_index: [2, E] int32."""
    n, d = x.shape
    h = params["w1l"].shape[1]

    tile = _pick_tile(n)
    np_ = _round_up(n, tile)
    dp = _round_up(d, 128)
    hp = _round_up(h, 128)

    # dense row-normalized mean-aggregation matrix (duplicate edges counted)
    src, dst = edge_index[0], edge_index[1]
    adj = jnp.zeros((n, n), jnp.float32).at[dst, src].add(1.0)
    deg = adj.sum(axis=1, keepdims=True)
    a = jnp.where(deg > 0, adj / jnp.maximum(deg, 1.0), 0.0)

    # pad + bf16-cast MXU operands (zero padding keeps the math exact on the
    # real N x N / D / H sub-block; padded rows/cols are sliced away at the end)
    a_p = jnp.zeros((np_, np_), jnp.bfloat16).at[:n, :n].set(a.astype(jnp.bfloat16))
    x_p = jnp.zeros((np_, dp), jnp.bfloat16).at[:n, :d].set(x.astype(jnp.bfloat16))

    def pad_w(w, rin, cout):
        return (jnp.zeros((rin, cout), jnp.bfloat16)
                .at[:w.shape[0], :w.shape[1]].set(w.astype(jnp.bfloat16)))

    def pad_b(b, cout):
        return (jnp.zeros((1, cout), jnp.float32)
                .at[:, :b.shape[1]].set(b.astype(jnp.float32)))

    # fused per-layer weights: [W_l ; W_r]  -> one K = 2*din matmul in-kernel
    w1 = jnp.concatenate([pad_w(params["w1l"], dp, hp),
                          pad_w(params["w1r"], dp, hp)], axis=0)
    b1 = pad_b(params["b1"], hp)
    w2 = jnp.concatenate([pad_w(params["w2l"], hp, hp),
                          pad_w(params["w2r"], hp, hp)], axis=0)
    b2 = pad_b(params["b2"], hp)
    wfc = pad_w(params["wfc"], hp, hp)
    bfc = pad_b(params["bfc"], hp)

    h1 = _sage_layer(a_p, x_p, w1, b1, tile)                         # [Np, Hp] bf16
    z = _sage_layer(a_p, h1, w2, b2, tile, wfc=wfc, bfc=bfc)         # [Np, Hp] bf16
    out = _similarity(z, tile)                                       # [Np, Np] f32
    return out[:n, :n]


def init_params(key, input_dim, hidden_dim):
    ks = jax.random.split(key, 8)
    scale = 0.1
    return {
        # SAGEConv1: lin_l (with bias) on aggregated, lin_r (no bias) on root
        "w1l": scale * jax.random.normal(ks[0], (input_dim, hidden_dim), jnp.float32),
        "w1r": scale * jax.random.normal(ks[1], (input_dim, hidden_dim), jnp.float32),
        "b1":  scale * jax.random.normal(ks[2], (1, hidden_dim), jnp.float32),
        # SAGEConv2
        "w2l": scale * jax.random.normal(ks[3], (hidden_dim, hidden_dim), jnp.float32),
        "w2r": scale * jax.random.normal(ks[4], (hidden_dim, hidden_dim), jnp.float32),
        "b2":  scale * jax.random.normal(ks[5], (1, hidden_dim), jnp.float32),
        # fc
        "wfc": scale * jax.random.normal(ks[6], (hidden_dim, hidden_dim), jnp.float32),
        "bfc": scale * jax.random.normal(ks[7], (1, hidden_dim), jnp.float32),
    }


def _reference(x, edge_index, params):
    """Pure-JAX f32 reference of the same forward pass (for validation)."""
    n = x.shape[0]
    src, dst = edge_index[0], edge_index[1]
    adj = jnp.zeros((n, n), jnp.float32).at[dst, src].add(1.0)
    deg = adj.sum(axis=1, keepdims=True)
    a = jnp.where(deg > 0, adj / jnp.maximum(deg, 1.0), 0.0)
    h1 = _leaky_relu((a @ x) @ params["w1l"] + params["b1"] + x @ params["w1r"])
    h2 = _leaky_relu((a @ h1) @ params["w2l"] + params["b2"] + h1 @ params["w2r"])
    z = h2 @ params["wfc"] + params["bfc"]
    return jax.nn.sigmoid(z @ z.T)


if __name__ == "__main__":
    input_dim = 64
    hidden_dim = 64
    num_nodes = 16
    num_edges = 32

    key = jax.random.PRNGKey(0)
    k_x, k_src, k_dst, k_p = jax.random.split(key, 4)

    x = jax.random.normal(k_x, (num_nodes, input_dim), jnp.float32)
    src = jax.random.randint(k_src, (num_edges,), 0, num_nodes, jnp.int32)
    dst = jax.random.randint(k_dst, (num_edges,), 0, num_nodes, jnp.int32)
    edge_index = jnp.stack([src, dst], axis=0)   # [2, E]

    params = init_params(k_p, input_dim, hidden_dim)

    out = community_detection_gnn(x, edge_index, params)
    out = jax.block_until_ready(out)

    assert out.shape == (num_nodes, num_nodes)
    assert bool(jnp.all(jnp.isfinite(out)))

    # loose-tolerance check vs pure-JAX f32 reference (bf16 MXU operands)
    ref = jax.block_until_ready(_reference(x, edge_index, params))
    max_err = float(jnp.max(jnp.abs(out - ref)))
    assert max_err < 0.1, f"max abs error vs reference too large: {max_err}"

    print("KERNEL_OK")
</pallas_src>

<mosaic_0001>
module attributes {stable_mosaic.version = 11 : i64} {
  func.func @sage_layer_kernel(%arg0: i32, %arg1: i32, %arg2: memref<128x128xbf16, #tpu.memory_space<vmem>>, %arg3: memref<128x128xbf16, #tpu.memory_space<vmem>>, %arg4: memref<128x128xbf16, #tpu.memory_space<vmem>>, %arg5: memref<256x128xbf16, #tpu.memory_space<vmem>>, %arg6: memref<1x128xf32, #tpu.memory_space<vmem>>, %arg7: memref<128x128xbf16, #tpu.memory_space<vmem>>, %arg8: memref<128x256xf32, #tpu.memory_space<vmem>>) attributes {dimension_semantics = [#tpu.dimension_semantics<parallel>, #tpu.dimension_semantics<arbitrary>], iteration_bounds = array<i64: 1, 1>, scalar_prefetch = 0 : i64, scratch_operands = 1 : i64, tpu.core_type = #tpu.core_type<tc>, window_params = [{transform_indices = @transform_0, window_bounds = array<i64: 128, 128>}, {transform_indices = @transform_1, window_bounds = array<i64: 128, 128>}, {transform_indices = @transform_2, window_bounds = array<i64: 128, 128>}, {pipeline_mode = #tpu.pipeline_mode<synchronous>, transform_indices = @transform_3, window_bounds = array<i64: 256, 128>}, {pipeline_mode = #tpu.pipeline_mode<synchronous>, transform_indices = @transform_4, window_bounds = array<i64: 1, 128>}, {transform_indices = @transform_5, window_bounds = array<i64: 128, 128>}]} {
    %c0_i32 = arith.constant 0 : i32
    %0 = arith.cmpi eq, %arg1, %c0_i32 : i32
    %1 = arith.extui %0 : i1 to i32
    %c0_i32_0 = arith.constant 0 : i32
    %2 = arith.cmpi ne, %1, %c0_i32_0 : i32
    scf.if %2 {
      %cst_10 = arith.constant 0.000000e+00 : f32
      %12 = vector.broadcast %cst_10 : f32 to vector<128x128xf32>
      %c0_11 = arith.constant 0 : index
      %c0_12 = arith.constant 0 : index
      %13 = vector.load %arg8[%c0_11, %c0_12] : memref<128x256xf32, #tpu.memory_space<vmem>>, vector<128x128xf32>
      tpu.vector_store %arg8[%c0_11, %c0_12], %12 {strides = array<i32>} : memref<128x256xf32, #tpu.memory_space<vmem>>, vector<128x128xf32>,
      %c0_13 = arith.constant 0 : index
      %c0_14 = arith.constant 0 : index
      %14 = vector.load %arg4[%c0_13, %c0_14] : memref<128x128xbf16, #tpu.memory_space<vmem>>, vector<128x128xbf16>
      %15 = arith.extf %14 : vector<128x128xbf16> to vector<128x128xf32>
      %c0_15 = arith.constant 0 : index
      %c128 = arith.constant 128 : index
      %16 = vector.load %arg8[%c0_15, %c128] : memref<128x256xf32, #tpu.memory_space<vmem>>, vector<128x128xf32>
      tpu.vector_store %arg8[%c0_15, %c128], %15 {strides = array<i32>} : memref<128x256xf32, #tpu.memory_space<vmem>>, vector<128x128xf32>,
    } else {
    }
    %c0 = arith.constant 0 : index
    %c0_1 = arith.constant 0 : index
    %3 = vector.load %arg8[%c0, %c0_1] : memref<128x256xf32, #tpu.memory_space<vmem>>, vector<128x128xf32>
    %c0_2 = arith.constant 0 : index
    %c0_3 = arith.constant 0 : index
    %4 = vector.load %arg2[%c0_2, %c0_3] : memref<128x128xbf16, #tpu.memory_space<vmem>>, vector<128x128xbf16>
    %c0_4 = arith.constant 0 : index
    %c0_5 = arith.constant 0 : index
    %5 = vector.load %arg3[%c0_4, %c0_5] : memref<128x128xbf16, #tpu.memory_space<vmem>>, vector<128x128xbf16>
    %cst = arith.constant dense<0.000000e+00> : vector<128x128xf32>
    %6 = tpu.matmul %4, %5, %cst {dimension_numbers = #tpu.dot_dimension_numbers<[1], [0], [0], [1], [0, 0, 1, 1], [], []>} : vector<128x128xbf16>, vector<128x128xbf16>, vector<128x128xf32> -> vector<128x128xf32>
    %7 = arith.addf %3, %6 : vector<128x128xf32>
    %c0_6 = arith.constant 0 : index
    %c0_7 = arith.constant 0 : index
    %8 = vector.load %arg8[%c0_6, %c0_7] : memref<128x256xf32, #tpu.memory_space<vmem>>, vector<128x128xf32>
    tpu.vector_store %arg8[%c0_6, %c0_7], %7 {strides = array<i32>} : memref<128x256xf32, #tpu.memory_space<vmem>>, vector<128x128xf32>,
    %c0_i32_8 = arith.constant 0 : i32
    %9 = arith.cmpi eq, %arg1, %c0_i32_8 : i32
    %10 = arith.extui %9 : i1 to i32
    %c0_i32_9 = arith.constant 0 : i32
    %11 = arith.cmpi ne, %10, %c0_i32_9 : i32
    scf.if %11 {
      %c0_10 = arith.constant 0 : index
      %c0_11 = arith.constant 0 : index
      %12 = vector.load %arg8[%c0_10, %c0_11] : memref<128x256xf32, #tpu.memory_space<vmem>>, vector<128x256xf32>
      %13 = arith.truncf %12 : vector<128x256xf32> to vector<128x256xbf16>
      %c0_12 = arith.constant 0 : index
      %c0_13 = arith.constant 0 : index
      %14 = vector.load %arg5[%c0_12, %c0_13] : memref<256x128xbf16, #tpu.memory_space<vmem>>, vector<256x128xbf16>
      %cst_14 = arith.constant dense<0.000000e+00> : vector<128x128xf32>
      %15 = tpu.matmul %13, %14, %cst_14 {dimension_numbers = #tpu.dot_dimension_numbers<[1], [0], [0], [1], [0, 0, 1, 1], [], []>} : vector<128x256xbf16>, vector<256x128xbf16>, vector<128x128xf32> -> vector<128x128xf32>
      %c0_15 = arith.constant 0 : index
      %c0_16 = arith.constant 0 : index
      %16 = vector.load %arg6[%c0_15, %c0_16] : memref<1x128xf32, #tpu.memory_space<vmem>>, vector<1x128xf32>
      %17 = vector.broadcast %16 : vector<1x128xf32> to vector<128x128xf32>
      %18 = arith.addf %15, %17 : vector<128x128xf32>
      %cst_17 = arith.constant 0.000000e+00 : f32
      %19 = vector.broadcast %cst_17 : f32 to vector<128x128xf32>
      %20 = arith.cmpf oge, %18, %19 : vector<128x128xf32>
      %cst_18 = arith.constant 0.00999999977 : f32
      %21 = vector.broadcast %cst_18 : f32 to vector<128x128xf32>
      %22 = arith.mulf %21, %18 : vector<128x128xf32>
      %23 = arith.select %20, %18, %22 : vector<128x128xi1>, vector<128x128xf32>
      %24 = arith.truncf %23 : vector<128x128xf32> to vector<128x128xbf16>
      %c0_19 = arith.constant 0 : index
      %c0_20 = arith.constant 0 : index
      %25 = vector.load %arg7[%c0_19, %c0_20] : memref<128x128xbf16, #tpu.memory_space<vmem>>, vector<128x128xbf16>
      tpu.vector_store %arg7[%c0_19, %c0_20], %24 {strides = array<i32>} : memref<128x128xbf16, #tpu.memory_space<vmem>>, vector<128x128xbf16>,
    } else {
    }
    return
  }
  func.func @transform_0(%arg0: i32, %arg1: i32) -> (i32, i32) {
    %c0_i32 = arith.constant 0 : i32
    return %arg0, %arg1 : i32, i32
  }
  func.func @transform_1(%arg0: i32, %arg1: i32) -> (i32, i32) {
    %c0_i32 = arith.constant 0 : i32
    %c0_i32_0 = arith.constant 0 : i32
    return %arg1, %c0_i32 : i32, i32
  }
  func.func @transform_2(%arg0: i32, %arg1: i32) -> (i32, i32) {
    %c0_i32 = arith.constant 0 : i32
    %c0_i32_0 = arith.constant 0 : i32
    return %arg0, %c0_i32 : i32, i32
  }
  func.func @transform_3(%arg0: i32, %arg1: i32) -> (i32, i32) {
    %c0_i32 = arith.constant 0 : i32
    %c0_i32_0 = arith.constant 0 : i32
    %c0_i32_1 = arith.constant 0 : i32
    return %c0_i32, %c0_i32_0 : i32, i32
  }
  func.func @transform_4(%arg0: i32, %arg1: i32) -> (i32, i32) {
    %c0_i32 = arith.constant 0 : i32
    %c0_i32_0 = arith.constant 0 : i32
    %c0_i32_1 = arith.constant 0 : i32
    return %c0_i32, %c0_i32_0 : i32, i32
  }
  func.func @transform_5(%arg0: i32, %arg1: i32) -> (i32, i32) {
    %c0_i32 = arith.constant 0 : i32
    %c0_i32_0 = arith.constant 0 : i32
    return %arg0, %c0_i32 : i32, i32
  }
}

</mosaic_0001>

<bundles_post_ra>
// kernel: tpu_custom_call.1
= control target key start
LH: loop header
LB: loop body
LE: loop exit
PB: predicated region body
PF: predicated region fallthrough
CT: control target
= control target key end

     0   :  { %10 = vsyncpa [#allocation4], 0  ;;  %s1431_s0 = inlined_call_operand.hbm [shape: bf16[128,128], index: 0, kind: input, shape index: {}]   ;;  %s1432_s1 = inlined_call_operand.hbm [shape: bf16[128,128], index: 1, kind: input, shape index: {}]   ;;  %s1433_s2 = inlined_call_operand.hbm [shape: bf16[128,128], index: 2, kind: input, shape index: {}]   ;;  %s1434_s3 = inlined_call_operand.hbm [shape: bf16[256,128], index: 3, kind: input, shape index: {}]   ;;  %s1435_s4 = inlined_call_operand.vmem [shape: f32[1,128], index: 4, kind: input, shape index: {}]   ;;  %s1436_s5 = inlined_call_operand.hbm [shape: bf16[128,128], index: 5, kind: output, shape index: {}]  }
   0x1   :  { %11 = vsyncpa [#allocation7], 0 }
   0x2   :  { %12 = vsyncpa [#allocation10], 0 }
   0x3   :  { %13 = vsyncpa [#allocation5], 0  ;;  %s1284_s18 = smov [#allocation6]   ;;  %s1285_s20 = smov [#allocation3]  }
   0x4   :  { %s31_s19 = sshll.u32 %s1284_s18, 4  ;;  %s19_s21 = sshll.u32 %s1285_s20, 4  ;;  %s32_s19 = int_to_ptr.vmem [resolvable:$true] %s31_s19  ;;  %s1321_s21 = int_to_ptr.vmem [resolvable:$true] %s19_s21 }
   0x5   :  { %s1166_s24 = scalar_lea.hbm %s1432_s1, 1024 }
   0x6   :  { %p1167_p0 = scmp.ne.s32.totalorder %s1432_s1, %s1166_s24  ;;  %p1170_p1 = scmp.lt.u32.totalorder %s1166_s24, %s1432_s1 }
   0x8   :  { %p1172_p2 = pnand %p1170_p1, %p1167_p0 }
   0xa   :  { %1175 = shalt.err (!%p1172_p2)
}
   0xb   :  { %s1176_s29 = scalar_lea.vmem %s32_s19, 1024  ;;  %p1181_p4 = scmp.lt.s32.totalorder %s32_s19, %s32_s19 }
   0xc   :  { %p1177_p3 = scmp.ne.s32.totalorder %s32_s19, %s1176_s29  ;;  %p1182_p5 = scmp.lt.s32.totalorder %s1176_s29, %s1176_s29 }
   0xe   :  { %p1183_p6 = por %p1182_p5, %p1181_p4 }
  0x10   :  { %p1184_p7 = pnand %p1183_p6, %p1177_p3 }
  0x12   :  { %1187 = shalt.err (!%p1184_p7)
}
  0x13   :  { %s1286_s30 = smov 64   ;;  %s1287_s6 = smov 4  }
  0x14   :  { %37 = dma.hbm_to_vmem [thread:$0]  %s1432_s1, 1024, %s32_s19, [#allocation7], %s1286_s30, %s1286_s30, %s1287_s6  }
  0x15   :  { %s1188_s11 = scalar_lea.hbm %s1431_s0, 1024 }
  0x16   :  { %p1189_p8 = scmp.ne.s32.totalorder %s1431_s0, %s1188_s11  ;;  %p1192_p9 = scmp.lt.u32.totalorder %s1188_s11, %s1431_s0 }
  0x18   :  { %p1194_p10 = pnand %p1192_p9, %p1189_p8 }
  0x1a   :  { %1197 = shalt.err (!%p1194_p10)
}
  0x1b   :  { %s1198_s16 = scalar_lea.vmem %s1321_s21, 1024  ;;  %p1203_p12 = scmp.lt.s32.totalorder %s1321_s21, %s1321_s21 }
  0x1c   :  { %p1199_p11 = scmp.ne.s32.totalorder %s1321_s21, %s1198_s16  ;;  %p1204_p13 = scmp.lt.s32.totalorder %s1198_s16, %s1198_s16 }
  0x1e   :  { %p1205_p0 = por %p1204_p13, %p1203_p12 }
  0x20   :  { %p1206_p1 = pnand %p1205_p0, %p1199_p11 }
  0x22   :  { %1209 = shalt.err (!%p1206_p1)
}
  0x23   :  { %25 = dma.hbm_to_vmem [thread:$0]  %s1431_s0, 1024, %s1321_s21, [#allocation4], %s1286_s30, %s1286_s30, %s1287_s6  }
  0x24   :  { %s1288_s18 = smov [#allocation8]   ;;  %s1289_s20 = smov [#allocation9]  }
  0x25   :  { %s43_s19 = sshll.u32 %s1288_s18, 4  ;;  %s55_s22 = sshll.u32 %s1289_s20, 4  ;;  %s44_s19 = int_to_ptr.vmem [resolvable:$true] %s43_s19  ;;  %s1358_s22 = int_to_ptr.vmem [resolvable:$true] %s55_s22 }
  0x26   :  { %s1210_s25 = scalar_lea.hbm %s1433_s2, 1024 }
  0x27   :  { %p1211_p2 = scmp.ne.s32.totalorder %s1433_s2, %s1210_s25  ;;  %p1214_p3 = scmp.lt.u32.totalorder %s1210_s25, %s1433_s2 }
  0x29   :  { %p1216_p4 = pnand %p1214_p3, %p1211_p2 }
  0x2b   :  { %1219 = shalt.err (!%p1216_p4)
}
  0x2c   :  { %s1220_s0 = scalar_lea.vmem %s44_s19, 1024  ;;  %p1225_p6 = scmp.lt.s32.totalorder %s44_s19, %s44_s19 }
  0x2d   :  { %p1221_p5 = scmp.ne.s32.totalorder %s44_s19, %s1220_s0  ;;  %p1226_p7 = scmp.lt.s32.totalorder %s1220_s0, %s1220_s0 }
  0x2f   :  { %p1227_p8 = por %p1226_p7, %p1225_p6 }
  0x31   :  { %p1228_p9 = pnand %p1227_p8, %p1221_p5 }
  0x33   :  { %1231 = shalt.err (!%p1228_p9)
}
  0x34   :  { %49 = dma.hbm_to_vmem [thread:$0]  %s1433_s2, 1024, %s44_s19, [#allocation7], %s1286_s30, %s1286_s30, %s1287_s6  }
  0x35   :  { %s1232_s10 = scalar_lea.hbm %s1434_s3, 2048 }
  0x36   :  { %p1233_p10 = scmp.ne.s32.totalorder %s1434_s3, %s1232_s10  ;;  %p1236_p11 = scmp.lt.u32.totalorder %s1232_s10, %s1434_s3 }
  0x38   :  { %p1238_p12 = pnand %p1236_p11, %p1233_p10 }
  0x3a   :  { %1241 = shalt.err (!%p1238_p12)
}
  0x3b   :  { %s1242_s15 = scalar_lea.vmem %s1358_s22, 2048  ;;  %p1247_p0 = scmp.lt.s32.totalorder %s1358_s22, %s1358_s22 }
  0x3c   :  { %p1243_p13 = scmp.ne.s32.totalorder %s1358_s22, %s1242_s15  ;;  %p1248_p1 = scmp.lt.s32.totalorder %s1242_s15, %s1242_s15 }
  0x3e   :  { %p1249_p2 = por %p1248_p1, %p1247_p0 }
  0x40   :  { %p1250_p3 = pnand %p1249_p2, %p1243_p13 }
  0x42   :  { %1253 = shalt.err (!%p1250_p3)
}
  0x43   :  { %61 = dma.hbm_to_vmem [thread:$0]  %s1434_s3, 2048, %s1358_s22, [#allocation10], %s1286_s30, %s1286_s30, %s1287_s6  }
  0x44   :  { %1276 = dma.done.wait [#allocation4], 1024  }
  0x45   :  { %1277 = vsyncadd [#allocation4], 4294966272 }
  0x46   :  { %1278 = dma.done.wait [#allocation7], 2048  }
  0x47   :  { %1279 = vsyncadd [#allocation7], 4294965248 }
  0x48   :  { %1280 = dma.done.wait [#allocation10], 2048  }
  0x49   :  { %1281 = vsyncadd [#allocation10], 4294965248  ;;  %v1134_v0 = vld [vmem:[#allocation6] sm:$0xff]   ;;  %v1135_v1 = vld [vmem:[#allocation6 + $0x8] sm:$0xff]  }
  0x4a   :  { %1079 = vmatprep.subr.bf16.mxu0 %v1134_v0  ;;  %v1136_v2 = vld [vmem:[#allocation6 + $0x10] sm:$0xff]   ;;  %v1137_v3 = vld [vmem:[#allocation6 + $0x18] sm:$0xff]   ;;  %v1142_v4 = vld [vmem:[#allocation3] sm:$0xff]  }
  0x4b   :  { %1080 = vmatpush3.bf16.msra.mxu0 %v1134_v0  ;;  %1095 = vmatprep.mubr.bf16.mxu0 %v1142_v4  ;;  %v1138_v5 = vld [vmem:[#allocation6 + $0x20] sm:$0xff]   ;;  %v1139_v6 = vld [vmem:[#allocation6 + $0x28] sm:$0xff]   ;;  %v1140_v10 = vld [vmem:[#allocation6 + $0x30] sm:$0xff]  }
  0x4c   :  { %1081 = vmatprep.subr.bf16.mxu0 %v1135_v1  ;;  %v1150_v7 = vld [vmem:[#allocation9 + $0x40] sm:$0xff]   ;;  %v1152_v9 = vld [vmem:[#allocation9 + $0x48] sm:$0xff]   ;;  %v1154_v12 = vld [vmem:[#allocation9 + $0x50] sm:$0xff]  }
  0x4d   :  { %v1151_v8 = vld [vmem:[#allocation9] sm:$0xff]   ;;  %1111 = vmatprep.subr.bf16.mxu1 %v1150_v7  ;;  %v1153_v11 = vld [vmem:[#allocation9 + $0x8] sm:$0xff]   ;;  %v1141_v13 = vld [vmem:[#allocation6 + $0x38] sm:$0xff]  }
  0x4e   :  { %1119 = vmatpush3.bf16.msra.mxu1 %v1151_v8  ;;  %v1155_v14 = vld [vmem:[#allocation9 + $0x10] sm:$0xff]   ;;  %v1156_v15 = vld [vmem:[#allocation9 + $0x58] sm:$0xff]   ;;  %v1143_v16 = vld [vmem:[#allocation3 + $0x8] sm:$0xff]  }
  0x4f   :  { %1082 = vmatpush3.bf16.msra.mxu0 %v1135_v1  ;;  %1112 = vmatprep.subr.bf16.mxu1 %v1152_v9  ;;  %v1157_v17 = vld [vmem:[#allocation9 + $0x18] sm:$0xff]   ;;  %v1158_v18 = vld [vmem:[#allocation9 + $0x60] sm:$0xff]   ;;  %v1144_v19 = vld [vmem:[#allocation3 + $0x10] sm:$0xff]  }
  0x50   :  { %1083 = vmatprep.subr.bf16.mxu0 %v1136_v2  ;;  %v1159_v20 = vld [vmem:[#allocation9 + $0x20] sm:$0xff]   ;;  %v1160_v21 = vld [vmem:[#allocation9 + $0x68] sm:$0xff]   ;;  %v1145_v22 = vld [vmem:[#allocation3 + $0x18] sm:$0xff]  }
  0x51   :  { %v1161_v23 = vld [vmem:[#allocation9 + $0x28] sm:$0xff]   ;;  %v1146_v24 = vld [vmem:[#allocation3 + $0x20] sm:$0xff]   ;;  %v1162_v25 = vld [vmem:[#allocation9 + $0x70] sm:$0xff]  }
  0x52   :  { %1120 = vmatpush3.bf16.msra.mxu1 %v1153_v11  ;;  %v1163_v26 = vld [vmem:[#allocation9 + $0x30] sm:$0xff]   ;;  %v1147_v27 = vld [vmem:[#allocation3 + $0x28] sm:$0xff]   ;;  %v1149_v29 = vld [vmem:[#allocation3 + $0x38] sm:$0xff]  }
  0x53   :  { %1084 = vmatpush3.bf16.msra.mxu0 %v1136_v2  ;;  %1113 = vmatprep.subr.bf16.mxu1 %v1154_v12  ;;  %v1148_v28 = vld [vmem:[#allocation3 + $0x30] sm:$0xff]   ;;  %v1164_v30 = vld [vmem:[#allocation9 + $0x78] sm:$0xff]   ;;  %v914_v32 = vld [vmem:[#allocation8] sm:$0xff]  }
  0x54   :  { %1085 = vmatprep.subr.bf16.mxu0 %v1137_v3  ;;  %v1165_v31 = vld [vmem:[#allocation9 + $0x38] sm:$0xff]   ;;  %v986_v33 = vld [vmem:[#allocation8 + $0x10] sm:$0xff]   ;;  %v985_v40 = vld [vmem:[#allocation8 + $0x8] sm:$0xff]  }
  0x55   :  { %652 = vmatprep.mubr.bf16.mxu1 %v986_v33  ;;  %v987_v47 = vld [vmem:[#allocation8 + $0x18] sm:$0xff]   ;;  %v988_v54 = vld [vmem:[#allocation8 + $0x20] sm:$0xff]   ;;  %v989_v60 = vld [vmem:[#allocation8 + $0x28] sm:$0xff]  }
  0x56   :  { %1121 = vmatpush3.bf16.msra.mxu1 %v1155_v14  ;;  %v990_v62 = vld [vmem:[#allocation8 + $0x30] sm:$0xff]   ;;  %v991_v63 = vld [vmem:[#allocation8 + $0x38] sm:$0xff]   ;;  %v1398_v1 = vld [vmem:[%s1435_s4] ss:$0 sm:$0xff]  ;;  %s1290_s4 = smov [#allocation11]  }
  0x57   :  { %1086 = vmatpush3.bf16.msra.mxu0 %v1137_v3  ;;  %1114 = vmatprep.subr.bf16.mxu1 %v1156_v15  ;;  %s834_s17 = sshll.u32 %s1290_s4, 4  ;;  %s835_s17 = int_to_ptr.vmem [resolvable:$true] %s834_s17 }
  0x58   :  { %1087 = vmatprep.subr.bf16.mxu0 %v1138_v5  ;;  %s1254_s18 = scalar_lea.vmem %s835_s17, 1024  ;;  %p1259_p5 = scmp.lt.s32.totalorder %s835_s17, %s835_s17 }
  0x59   :  { %p1255_p4 = scmp.ne.s32.totalorder %s835_s17, %s1254_s18  ;;  %p1260_p6 = scmp.lt.s32.totalorder %s1254_s18, %s1254_s18 }
  0x5a   :  { %1122 = vmatpush3.bf16.msra.mxu1 %v1157_v17 }
  0x5b   :  { %1088 = vmatpush3.bf16.msra.mxu0 %v1138_v5  ;;  %1115 = vmatprep.subr.bf16.mxu1 %v1158_v18  ;;  %p1261_p7 = por %p1260_p6, %p1259_p5 }
  0x5c   :  { %1089 = vmatprep.subr.bf16.mxu0 %v1139_v6 }
  0x5d   :  { %p1262_p8 = pnand %p1261_p7, %p1255_p4 }
  0x5e   :  { %1123 = vmatpush3.bf16.msra.mxu1 %v1159_v20 }
  0x5f   :  { %1090 = vmatpush3.bf16.msra.mxu0 %v1139_v6  ;;  %1116 = vmatprep.subr.bf16.mxu1 %v1160_v21 }
  0x60   :  { %1091 = vmatprep.subr.bf16.mxu0 %v1140_v10 }
  0x62   :  { %1124 = vmatpush3.bf16.msra.mxu1 %v1161_v23 }
  0x63   :  { %1092 = vmatpush3.bf16.msra.mxu0 %v1140_v10  ;;  %1117 = vmatprep.subr.bf16.mxu1 %v1162_v25 }
  0x64   :  { %1093 = vmatprep.subr.bf16.mxu0 %v1141_v13 }
  0x66   :  { %1125 = vmatpush3.bf16.msra.mxu1 %v1163_v26 }
  0x67   :  { %1094 = vmatpush3.bf16.msra.mxu0 %v1141_v13  ;;  %1118 = vmatprep.subr.bf16.mxu1 %v1164_v30 }
  0x68   :  { %1015 = vmatprep.subr.bf16.mxu0 %v1150_v7 }
  0x6a   :  { %1096 = vmatmul.mubr.bf16.vlgmr.msra.gmra.mrb[0].mxu0 %v1143_v16  ;;  %1126 = vmatpush3.bf16.msra.mxu1 %v1165_v31 }
  0x6b   :  { %1099 = vmatprep.mubr.bf16.mxu0 %v1144_v19  ;;  %1016 = vmatpush3.bf16.msra.mxu0 %v1151_v8 }
  0x6c   :  { %1017 = vmatprep.subr.bf16.mxu0 %v1152_v9 }
  0x6f   :  { %1018 = vmatpush3.bf16.msra.mxu0 %v1153_v11 }
  0x70   :  { %1019 = vmatprep.subr.bf16.mxu0 %v1154_v12 }
  0x72   :  { %1100 = vmatmul.mubr.bf16.gmra.mrb[4].mxu0 %v1145_v22 }
  0x73   :  { %1103 = vmatprep.mubr.bf16.mxu0 %v1146_v24  ;;  %1020 = vmatpush3.bf16.msra.mxu0 %v1155_v14 }
  0x74   :  { %1021 = vmatprep.subr.bf16.mxu0 %v1156_v15 }
  0x77   :  { %1022 = vmatpush3.bf16.msra.mxu0 %v1157_v17 }
  0x78   :  { %1023 = vmatprep.subr.bf16.mxu0 %v1158_v18 }
  0x7a   :  { %1104 = vmatmul.mubr.bf16.gmra.mrb[8].mxu0 %v1147_v27 }
  0x7b   :  { %1107 = vmatprep.mubr.bf16.mxu0 %v1148_v28  ;;  %1024 = vmatpush3.bf16.msra.mxu0 %v1159_v20 }
  0x7c   :  { %1025 = vmatprep.subr.bf16.mxu0 %v1160_v21 }
  0x7f   :  { %1026 = vmatpush3.bf16.msra.mxu0 %v1161_v23 }
  0x80   :  { %1027 = vmatprep.subr.bf16.mxu0 %v1162_v25 }
  0x82   :  { %1108 = vmatmul.mubr.bf16.gmra.mrb[12].mxu0 %v1149_v29 }
  0x83   :  { %1028 = vmatpush3.bf16.msra.mxu0 %v1163_v26  ;;  %636 = vmatprep.mubr.bf16.mxu0 %v914_v32 }
  0x84   :  { %1029 = vmatprep.subr.bf16.mxu0 %v1164_v30 }
  0x87   :  { %1030 = vmatpush3.bf16.msra.mxu0 %v1165_v31 }
 0x13d   :  { %v1097_v34 = vpop.f32.mrb[0].mxu0 }
 0x13e   :  { %v323_v35 = vpop.f32.mrb[1].mxu0 }
 0x13f   :  { %v1098_v36 = vpop.f32.mrb[2].mxu0 }
 0x140   :  { %v455_v37 = vpack.c.bf16 %v1098_v36, %v1097_v34  ;;  %v326_v38 = vpop.f32.mrb[3].mxu0 }
 0x141   :  { %v453_v39 = vpack.c.bf16 %v326_v38, %v323_v35 }
 0x143   :  { %637 = vmatmul.mubr.bf16.vlgmr.msra.gmra.mrb[16].mxu0 %v453_v39 }
 0x144   :  { %644 = vmatprep.mubr.bf16.mxu0 %v985_v40 }
 0x145   :  { %v1101_v41 = vpop.f32.mrb[4].mxu0 }
 0x146   :  { %v339_v42 = vpop.f32.mrb[5].mxu0 }
 0x147   :  { %v1102_v43 = vpop.f32.mrb[6].mxu0 }
 0x148   :  { %v459_v44 = vpack.c.bf16 %v1102_v43, %v1101_v41  ;;  %v342_v45 = vpop.f32.mrb[7].mxu0 }
 0x149   :  { %v457_v46 = vpack.c.bf16 %v342_v45, %v339_v42 }
 0x14b   :  { %645 = vmatmul.mubr.bf16.gmra.mrb[20].mxu0 %v455_v37  ;;  %653 = vmatmul.mubr.bf16.vlgmr.msra.gmra.mrb[0].mxu1 %v457_v46 }
 0x14c   :  { %660 = vmatprep.mubr.bf16.mxu1 %v987_v47 }
 0x14d   :  { %v1105_v48 = vpop.f32.mrb[8].mxu0 }
 0x14e   :  { %v355_v49 = vpop.f32.mrb[9].mxu0 }
 0x14f   :  { %v1106_v50 = vpop.f32.mrb[10].mxu0 }
 0x150   :  { %v463_v51 = vpack.c.bf16 %v1106_v50, %v1105_v48  ;;  %v358_v52 = vpop.f32.mrb[11].mxu0 }
 0x151   :  { %v461_v53 = vpack.c.bf16 %v358_v52, %v355_v49 }
 0x153   :  { %661 = vmatmul.mubr.bf16.gmra.mrb[4].mxu1 %v459_v44 }
 0x154   :  { %668 = vmatprep.mubr.bf16.mxu1 %v988_v54 }
 0x155   :  { %v1109_v55 = vpop.f32.mrb[12].mxu0 }
 0x156   :  { %v371_v56 = vpop.f32.mrb[13].mxu0 }
 0x157   :  { %v1110_v57 = vpop.f32.mrb[14].mxu0 }
 0x158   :  { %v467_v58 = vpack.c.bf16 %v1110_v57, %v1109_v55  ;;  %v374_v59 = vpop.f32.mrb[15].mxu0 }
 0x159   :  { %v465_v61 = vpack.c.bf16 %v374_v59, %v371_v56 }
 0x15b   :  { %669 = vmatmul.mubr.bf16.gmra.mrb[8].mxu1 %v461_v53 }
 0x15c   :  { %676 = vmatprep.mubr.bf16.mxu1 %v989_v60 }
 0x163   :  { %677 = vmatmul.mubr.bf16.gmra.mrb[12].mxu1 %v463_v51 }
 0x164   :  { %684 = vmatprep.mubr.bf16.mxu1 %v990_v62 }
 0x16b   :  { %685 = vmatmul.mubr.bf16.gmra.mrb[16].mxu1 %v465_v61 }
 0x16c   :  { %692 = vmatprep.mubr.bf16.mxu1 %v991_v63 }
 0x173   :  { %693 = vmatmul.mubr.bf16.gmra.mrb[20].mxu1 %v467_v58 }
 0x216   :  { %v1031_v0 = vpop.f32.mrb[16].mxu0 }
 0x217   :  { %v1032_v2 = vpop.f32.mrb[17].mxu0 }
 0x218   :  { %v1033_v3 = vadd.f32 %v1032_v2, %v1031_v0  ;;  %v1034_v4 = vpop.f32.mrb[18].mxu0 }
 0x219   :  { %v1035_v5 = vpop.f32.mrb[19].mxu0 }
 0x21a   :  { %v639_v6 = vadd.f32 %v1033_v3, %v1398_v1  ;;  %v1036_v7 = vadd.f32 %v1035_v5, %v1034_v4 }
 0x21c   :  { %v717_v8 = vmul.f32 0.01, %v639_v6  ;;  %v642_v9 = vadd.f32 %v1036_v7, %v1398_v1  ;;  %vm701_vm0 = vcmp.ge.f32.partialorder %v639_v6, 0.0 }
 0x21e   :  { %vm702_vm1 = vcmp.ge.f32.partialorder %v642_v9, 0.0  ;;  %v718_v10 = vmul.f32 0.01, %v642_v9  ;;  %v1037_v11 = vpop.f32.mrb[20].mxu0  ;;  %v1043_v12 = vpop.f32.mrb[0].mxu1  ;;  %v733_v15 = vsel %vm701_vm0, %v639_v6, %v717_v8 }
 0x21f   :  { %v1038_v13 = vpop.f32.mrb[21].mxu0  ;;  %v1044_v14 = vpop.f32.mrb[1].mxu1 }
 0x220   :  { %v734_v16 = vsel %vm702_vm1, %v642_v9, %v718_v10  ;;  %v1039_v17 = vadd.f32 %v1038_v13, %v1037_v11  ;;  %v1045_v18 = vadd.f32 %v1044_v14, %v1043_v12  ;;  %v1040_v19 = vpop.f32.mrb[22].mxu0  ;;  %v1046_v20 = vpop.f32.mrb[2].mxu1 }
 0x221   :  { %v948_v21 = vpack.c.bf16 %v734_v16, %v733_v15  ;;  %v1041_v22 = vpop.f32.mrb[23].mxu0  ;;  %v1047_v23 = vpop.f32.mrb[3].mxu1 }
 0x222   :  { %v647_v24 = vadd.f32 %v1039_v17, %v1398_v1  ;;  %v655_v25 = vadd.f32 %v1045_v18, %v1398_v1  ;;  %v1042_v26 = vadd.f32 %v1041_v22, %v1040_v19  ;;  %v1048_v27 = vadd.f32 %v1047_v23, %v1046_v20 }
 0x223   :  { %949 = vst [vmem:[#allocation11] sm:$0xff] %v948_v21  }
 0x224   :  { %v719_v28 = vmul.f32 0.01, %v647_v24  ;;  %vm703_vm2 = vcmp.ge.f32.partialorder %v647_v24, 0.0  ;;  %v721_v29 = vmul.f32 0.01, %v655_v25  ;;  %v650_v30 = vadd.f32 %v1042_v26, %v1398_v1 }
 0x225   :  { %v658_v31 = vadd.f32 %v1048_v27, %v1398_v1  ;;  %vm705_vm3 = vcmp.ge.f32.partialorder %v655_v25, 0.0 }
 0x226   :  { %v1049_v32 = vpop.f32.mrb[4].mxu1  ;;  %vm704_vm4 = vcmp.ge.f32.partialorder %v650_v30, 0.0  ;;  %v720_v33 = vmul.f32 0.01, %v650_v30  ;;  %v735_v35 = vsel %vm703_vm2, %v647_v24, %v719_v28  ;;  %v737_v37 = vsel %vm705_vm3, %v655_v25, %v721_v29 }
 0x227   :  { %vm706_vm5 = vcmp.ge.f32.partialorder %v658_v31, 0.0  ;;  %v722_v34 = vmul.f32 0.01, %v658_v31  ;;  %v1050_v36 = vpop.f32.mrb[5].mxu1 }
 0x228   :  { %v736_v38 = vsel %vm704_vm4, %v650_v30, %v720_v33  ;;  %v1051_v40 = vadd.f32 %v1050_v36, %v1049_v32  ;;  %v1052_v41 = vpop.f32.mrb[6].mxu1 }
 0x229   :  { %v738_v39 = vsel %vm706_vm5, %v658_v31, %v722_v34  ;;  %v953_v42 = vpack.c.bf16 %v736_v38, %v735_v35  ;;  %v1053_v44 = vpop.f32.mrb[7].mxu1 }
 0x22a   :  { %v958_v43 = vpack.c.bf16 %v738_v39, %v737_v37  ;;  %v663_v45 = vadd.f32 %v1051_v40, %v1398_v1  ;;  %v1054_v46 = vadd.f32 %v1053_v44, %v1052_v41 }
 0x22b   :  { %992 = vst [vmem:[#allocation11 + $0x8] sm:$0xff] %v953_v42  }
 0x22c   :  { %993 = vst [vmem:[#allocation11 + $0x10] sm:$0xff] %v958_v43   ;;  %v723_v47 = vmul.f32 0.01, %v663_v45  ;;  %v666_v48 = vadd.f32 %v1054_v46, %v1398_v1  ;;  %vm707_vm6 = vcmp.ge.f32.partialorder %v663_v45, 0.0 }
 0x22e   :  { %v1055_v49 = vpop.f32.mrb[8].mxu1  ;;  %vm708_vm7 = vcmp.ge.f32.partialorder %v666_v48, 0.0  ;;  %v724_v50 = vmul.f32 0.01, %v666_v48  ;;  %v739_v54 = vsel %vm707_vm6, %v663_v45, %v723_v47 }
 0x22f   :  { %v1056_v51 = vpop.f32.mrb[9].mxu1 }
 0x230   :  { %v1057_v52 = vadd.f32 %v1056_v51, %v1055_v49  ;;  %v1058_v53 = vpop.f32.mrb[10].mxu1  ;;  %v740_v55 = vsel %vm708_vm7, %v666_v48, %v724_v50 }
 0x231   :  { %v1059_v56 = vpop.f32.mrb[11].mxu1  ;;  %v963_v57 = vpack.c.bf16 %v740_v55, %v739_v54 }
 0x232   :  { %v671_v58 = vadd.f32 %v1057_v52, %v1398_v1  ;;  %v1060_v59 = vadd.f32 %v1059_v56, %v1058_v53 }
 0x233   :  { %994 = vst [vmem:[#allocation11 + $0x18] sm:$0xff] %v963_v57  }
 0x234   :  { %v725_v60 = vmul.f32 0.01, %v671_v58  ;;  %v674_v61 = vadd.f32 %v1060_v59, %v1398_v1  ;;  %vm709_vm8 = vcmp.ge.f32.partialorder %v671_v58, 0.0 }
 0x236   :  { %vm710_vm9 = vcmp.ge.f32.partialorder %v674_v61, 0.0  ;;  %v726_v62 = vmul.f32 0.01, %v674_v61  ;;  %v1061_v63 = vpop.f32.mrb[12].mxu1  ;;  %v741_v2 = vsel %vm709_vm8, %v671_v58, %v725_v60 }
 0x237   :  { %v1062_v0 = vpop.f32.mrb[13].mxu1 }
 0x238   :  { %v742_v3 = vsel %vm710_vm9, %v674_v61, %v726_v62  ;;  %v1063_v4 = vadd.f32 %v1062_v0, %v1061_v63  ;;  %v1064_v5 = vpop.f32.mrb[14].mxu1 }
 0x239   :  { %v968_v6 = vpack.c.bf16 %v742_v3, %v741_v2  ;;  %v1065_v7 = vpop.f32.mrb[15].mxu1 }
 0x23a   :  { %v679_v8 = vadd.f32 %v1063_v4, %v1398_v1  ;;  %v1066_v9 = vadd.f32 %v1065_v7, %v1064_v5 }
 0x23b   :  { %995 = vst [vmem:[#allocation11 + $0x20] sm:$0xff] %v968_v6  }
 0x23c   :  { %v727_v10 = vmul.f32 0.01, %v679_v8  ;;  %v682_v11 = vadd.f32 %v1066_v9, %v1398_v1  ;;  %vm711_vm10 = vcmp.ge.f32.partialorder %v679_v8, 0.0 }
 0x23e   :  { %vm712_vm11 = vcmp.ge.f32.partialorder %v682_v11, 0.0  ;;  %v728_v12 = vmul.f32 0.01, %v682_v11  ;;  %v1067_v13 = vpop.f32.mrb[16].mxu1  ;;  %v743_v15 = vsel %vm711_vm10, %v679_v8, %v727_v10 }
 0x23f   :  { %v1068_v14 = vpop.f32.mrb[17].mxu1 }
 0x240   :  { %v744_v16 = vsel %vm712_vm11, %v682_v11, %v728_v12  ;;  %v1069_v17 = vadd.f32 %v1068_v14, %v1067_v13  ;;  %v1070_v18 = vpop.f32.mrb[18].mxu1 }
 0x241   :  { %v973_v19 = vpack.c.bf16 %v744_v16, %v743_v15  ;;  %v1071_v20 = vpop.f32.mrb[19].mxu1 }
 0x242   :  { %v687_v21 = vadd.f32 %v1069_v17, %v1398_v1  ;;  %v1072_v22 = vadd.f32 %v1071_v20, %v1070_v18 }
 0x243   :  { %996 = vst [vmem:[#allocation11 + $0x28] sm:$0xff] %v973_v19  }
 0x244   :  { %v729_v23 = vmul.f32 0.01, %v687_v21  ;;  %v690_v24 = vadd.f32 %v1072_v22, %v1398_v1  ;;  %vm713_vm12 = vcmp.ge.f32.partialorder %v687_v21, 0.0 }
 0x246   :  { %vm714_vm13 = vcmp.ge.f32.partialorder %v690_v24, 0.0  ;;  %v730_v25 = vmul.f32 0.01, %v690_v24  ;;  %v1073_v26 = vpop.f32.mrb[20].mxu1  ;;  %v745_v28 = vsel %vm713_vm12, %v687_v21, %v729_v23 }
 0x247   :  { %v1074_v27 = vpop.f32.mrb[21].mxu1 }
 0x248   :  { %v746_v29 = vsel %vm714_vm13, %v690_v24, %v730_v25  ;;  %v1075_v30 = vadd.f32 %v1074_v27, %v1073_v26  ;;  %v1076_v31 = vpop.f32.mrb[22].mxu1 }
 0x249   :  { %v978_v32 = vpack.c.bf16 %v746_v29, %v745_v28  ;;  %v1077_v33 = vpop.f32.mrb[23].mxu1 }
 0x24a   :  { %v695_v34 = vadd.f32 %v1075_v30, %v1398_v1  ;;  %v1078_v35 = vadd.f32 %v1077_v33, %v1076_v31 }
 0x24b   :  { %997 = vst [vmem:[#allocation11 + $0x30] sm:$0xff] %v978_v32  }
 0x24c   :  { %v731_v36 = vmul.f32 0.01, %v695_v34  ;;  %v698_v37 = vadd.f32 %v1078_v35, %v1398_v1  ;;  %vm715_vm14 = vcmp.ge.f32.partialorder %v695_v34, 0.0 }
 0x24e   :  { %vm716_vm15 = vcmp.ge.f32.partialorder %v698_v37, 0.0  ;;  %v732_v38 = vmul.f32 0.01, %v698_v37  ;;  %v747_v39 = vsel %vm715_vm14, %v695_v34, %v731_v36 }
 0x250   :  { %v748_v40 = vsel %vm716_vm15, %v698_v37, %v732_v38 }
 0x251   :  { %v983_v41 = vpack.c.bf16 %v748_v40, %v747_v39 }
 0x253   :  { %998 = vst [vmem:[#allocation11 + $0x38] sm:$0xff] %v983_v41  }
 0x254   :  { %1265 = shalt.err (!%p1262_p8)
}
 0x255   :  { %s1266_s22 = scalar_lea.hbm %s1436_s5, 1024 }
 0x256   :  { %p1267_p9 = scmp.ne.s32.totalorder %s1436_s5, %s1266_s22  ;;  %p1270_p10 = scmp.lt.u32.totalorder %s1266_s22, %s1436_s5 }
 0x258   :  { %p1272_p11 = pnand %p1270_p10, %p1267_p9 }
 0x25a   :  { %1275 = shalt.err (!%p1272_p11)
}
 0x25b   :  { %840 = dma.vmem_to_hbm [thread:$0]  %s835_s17, 1024, %s1436_s5, [#allocation5], %s1286_s30, %s1286_s30, %s1287_s6  }
 0x25c   :  { %1282 = dma.done.wait [#allocation5], 1024  }
 0x25d   :  { %1283 = vsyncadd [#allocation5], 4294966272 }
 0x25e   :  { %844 = vsyncpa [#allocation4], 1 }
 0x25f   :  { %845 = vsyncpa [#allocation7], 1 }
 0x260   :  { %846 = vsyncpa [#allocation10], 1 }
 0x261   :  { %847 = vsyncpa [#allocation5], 1 }

</bundles_post_ra>
